<compile_context>
chip_gen: v7x
topology: tpu7x:2x2x1
jax: 0.10.0
libtpu: 0.0.40
codegen_flags: <defaults>
</compile_context>

<pallas_src>
import functools
import math

import jax
import jax.numpy as jnp
import numpy as np
from jax import lax
from jax.experimental import pallas as pl
from jax.experimental.pallas import tpu as pltpu

_SQRT_2_OVER_PI = 0.7978845608028654
_LN_EPS = 1e-5
_F32 = jnp.float32
_BF16 = jnp.bfloat16


def _gelu_tanh(x):
    # TODO(synk): PyTorch F.gelu defaults to the exact erf form; the tanh approximation
    # (EUP tanh, guaranteed Mosaic lowering) matches it to ~1e-3.
    return 0.5 * x * (1.0 + jnp.tanh(_SQRT_2_OVER_PI * (x + 0.044715 * x * x * x)))


# ----------------------------------------------------------------------------
# Small helpers
# ----------------------------------------------------------------------------
def _pick_tile(n, target):
    """Largest multiple of 8 that divides n and is <= target (else the full dim)."""
    if n <= target:
        return n
    t = (target // 8) * 8
    while t >= 8:
        if n % t == 0:
            return t
        t -= 8
    return n


def _vmem_limit_bytes():
    # Leave headroom below physical VMEM (64 MiB on v7x, 128 MiB on v5e/v6e).
    try:
        cap = pltpu.get_tpu_info().vmem_capacity_bytes
    except Exception:
        cap = 128 * 1024 * 1024
    return int(min(cap * 3 // 4, 96 * 1024 * 1024))


def _cparams(semantics):
    return pltpu.CompilerParams(dimension_semantics=semantics,
                                vmem_limit_bytes=_vmem_limit_bytes())


def _cost(flops, transcendentals, operands, out_bytes):
    in_bytes = sum(int(a.size) * a.dtype.itemsize for a in operands)
    return pl.CostEstimate(flops=int(flops), transcendentals=int(transcendentals),
                           bytes_accessed=int(in_bytes + out_bytes))


def _full_spec(shape):
    rank = len(shape)
    return pl.BlockSpec(shape, lambda *_idx: (0,) * rank)


def _to_heads(t, h):
    # (B, N, h*d) -> (B*h, N, d)
    b, n, hd = t.shape
    return t.reshape(b, n, h, hd // h).transpose(0, 2, 1, 3).reshape(b * h, n, hd // h)


def _from_heads(t, h):
    # (B*h, N, d) -> (B, N, h*d)
    bh, n, d = t.shape
    b = bh // h
    return t.reshape(b, h, n, d).transpose(0, 2, 1, 3).reshape(b, n, h * d)


# ----------------------------------------------------------------------------
# Kernels
# ----------------------------------------------------------------------------
def _ln_proj_kernel(*refs, num_out, apply_ln, eps):
    """out[i] = (LayerNorm(x) if apply_ln else x) @ W[i]; bf16 MXU, f32 LN stats."""
    i = 0
    x_ref = refs[i]; i += 1
    if apply_ln:
        nw_ref, nb_ref = refs[i], refs[i + 1]
        i += 2
    w_refs = refs[i:i + num_out]
    out_refs = refs[i + num_out:]

    if apply_ln:
        x = x_ref[0].astype(_F32)                       # (TR, D)
        mu = jnp.mean(x, axis=-1, keepdims=True)
        c = x - mu
        var = jnp.mean(c * c, axis=-1, keepdims=True)
        h = (c * lax.rsqrt(var + eps) * nw_ref[...].astype(_F32)
             + nb_ref[...].astype(_F32)).astype(_BF16)
    else:
        h = x_ref[0].astype(_BF16)
    for w_ref, o_ref in zip(w_refs, out_refs):
        o_ref[0] = jnp.dot(h, w_ref[...], preferred_element_type=_F32).astype(o_ref.dtype)


def _flash_attn_kernel(q_ref, kt_ref, v_ref, o_ref, m_sc, l_sc, acc_sc):
    """Online-softmax attention tile.  q: (TQ,Dh) pre-scaled, kt: (Dh,TKV), v: (TKV,Dh)."""
    ki = pl.program_id(2)

    @pl.when(ki == 0)
    def _():
        m_sc[...] = jnp.full(m_sc.shape, -jnp.inf, m_sc.dtype)
        l_sc[...] = jnp.zeros(l_sc.shape, l_sc.dtype)
        acc_sc[...] = jnp.zeros(acc_sc.shape, acc_sc.dtype)

    q = q_ref[0]                                          # (TQ, Dh) bf16 (scale folded in)
    kt = kt_ref[0]                                        # (Dh, TKV) bf16
    v = v_ref[0]                                          # (TKV, Dh) bf16
    s = jnp.dot(q, kt, preferred_element_type=_F32)       # (TQ, TKV) f32

    m_prev = m_sc[...]
    m_new = jnp.maximum(m_prev, jnp.max(s, axis=-1, keepdims=True))
    alpha = jnp.exp(m_prev - m_new)
    p = jnp.exp(s - m_new)
    l_sc[...] = alpha * l_sc[...] + jnp.sum(p, axis=-1, keepdims=True)
    acc_sc[...] = alpha * acc_sc[...] + jnp.dot(p.astype(v.dtype), v,
                                                preferred_element_type=_F32)
    m_sc[...] = m_new

    @pl.when(ki == pl.num_programs(2) - 1)
    def _():
        inv_l = pl.reciprocal(l_sc[...], approx=True)     # EUP; (TQ,1) not (TQ,TKV)
        o_ref[0] = (acc_sc[...] * inv_l).astype(o_ref.dtype)


def _attn_out_kernel(o_ref, wo_ref, bo_ref, res_ref, y_ref):
    """y = o @ Wo + bo + residual (residual kept f32)."""
    y = jnp.dot(o_ref[0], wo_ref[...], preferred_element_type=_F32)
    y_ref[0] = (y + bo_ref[...].astype(_F32) + res_ref[0].astype(_F32)).astype(y_ref.dtype)


def _ff_kernel(x_ref, nw_ref, nb_ref, wa_ref, ba_ref, wg_ref, bg_ref, w2_ref, b2_ref,
               y_ref, *, eps):
    """y = x + (a * gelu(gate)) @ W2 + b2 with a/gate from separate lane-dense matmuls."""
    x = x_ref[0].astype(_F32)
    mu = jnp.mean(x, axis=-1, keepdims=True)
    c = x - mu
    var = jnp.mean(c * c, axis=-1, keepdims=True)
    h = (c * lax.rsqrt(var + eps) * nw_ref[...].astype(_F32)
         + nb_ref[...].astype(_F32)).astype(_BF16)
    a = jnp.dot(h, wa_ref[...], preferred_element_type=_F32) + ba_ref[...].astype(_F32)
    g = jnp.dot(h, wg_ref[...], preferred_element_type=_F32) + bg_ref[...].astype(_F32)
    gg = (a * _gelu_tanh(g)).astype(_BF16)
    y = jnp.dot(gg, w2_ref[...], preferred_element_type=_F32) + b2_ref[...].astype(_F32)
    y_ref[0] = (x + y).astype(y_ref.dtype)


# ----------------------------------------------------------------------------
# pallas_call wrappers
# ----------------------------------------------------------------------------
def _ln_multi_proj(x, ln_w, ln_b, weights, *, apply_ln, row_tile, eps):
    B, S, D = x.shape
    tr = _pick_tile(S, row_tile)
    grid = (B, S // tr)

    in_specs = [pl.BlockSpec((1, tr, D), lambda b, r: (b, r, 0))]
    operands = [x]
    if apply_ln:
        in_specs += [_full_spec(ln_w.shape), _full_spec(ln_b.shape)]
        operands += [ln_w, ln_b]
    for w in weights:
        in_specs.append(_full_spec(w.shape))
        operands.append(w)

    out_shape = tuple(jax.ShapeDtypeStruct((B, S, w.shape[1]), _BF16) for w in weights)
    out_specs = tuple(pl.BlockSpec((1, tr, w.shape[1]), lambda b, r: (b, r, 0))
                      for w in weights)
    flops = sum(2 * B * S * D * w.shape[1] for w in weights)
    out_bytes = sum(B * S * w.shape[1] * 2 for w in weights)

    kernel = functools.partial(_ln_proj_kernel, num_out=len(weights),
                               apply_ln=apply_ln, eps=eps)
    outs = pl.pallas_call(
        kernel,
        out_shape=out_shape,
        grid=grid,
        in_specs=in_specs,
        out_specs=out_specs,
        compiler_params=_cparams(("parallel", "parallel")),
        cost_estimate=_cost(flops, 0, operands, out_bytes),
    )(*operands)
    if not isinstance(outs, (list, tuple)):
        outs = (outs,)
    return list(outs)


def _flash_attention(q_hm, k_hm, v_hm, *, q_tile, kv_tile):
    BH, S, Dh = q_hm.shape
    _, Skv, _ = k_hm.shape
    kt_hm = jnp.swapaxes(k_hm, 1, 2)                     # (BH, Dh, Skv): plain QK^T matmul
    tq = _pick_tile(S, q_tile)
    tk = _pick_tile(Skv, kv_tile)
    grid = (BH, S // tq, Skv // tk)
    flops = 4 * BH * S * Skv * Dh
    return pl.pallas_call(
        _flash_attn_kernel,
        out_shape=jax.ShapeDtypeStruct((BH, S, Dh), _BF16),
        grid=grid,
        in_specs=[
            pl.BlockSpec((1, tq, Dh), lambda bh, qi, ki: (bh, qi, 0)),
            pl.BlockSpec((1, Dh, tk), lambda bh, qi, ki: (bh, 0, ki)),
            pl.BlockSpec((1, tk, Dh), lambda bh, qi, ki: (bh, ki, 0)),
        ],
        out_specs=pl.BlockSpec((1, tq, Dh), lambda bh, qi, ki: (bh, qi, 0)),
        scratch_shapes=[
            pltpu.VMEM((tq, 1), _F32),     # running max
            pltpu.VMEM((tq, 1), _F32),     # running sum
            pltpu.VMEM((tq, Dh), _F32),    # output accumulator
        ],
        compiler_params=_cparams(("parallel", "parallel", "arbitrary")),
        cost_estimate=_cost(flops, BH * S * Skv, (q_hm, k_hm, v_hm), BH * S * Dh * 2),
    )(q_hm, kt_hm, v_hm)


def _attn_out(o, wo, bo, residual, *, row_tile):
    B, S, D = residual.shape
    inner = o.shape[-1]
    tr = _pick_tile(S, row_tile)
    grid = (B, S // tr)
    return pl.pallas_call(
        _attn_out_kernel,
        out_shape=jax.ShapeDtypeStruct((B, S, D), residual.dtype),
        grid=grid,
        in_specs=[
            pl.BlockSpec((1, tr, inner), lambda b, r: (b, r, 0)),
            _full_spec(wo.shape),
            _full_spec(bo.shape),
            pl.BlockSpec((1, tr, D), lambda b, r: (b, r, 0)),
        ],
        out_specs=pl.BlockSpec((1, tr, D), lambda b, r: (b, r, 0)),
        compiler_params=_cparams(("parallel", "parallel")),
        cost_estimate=_cost(2 * B * S * inner * D, 0, (o, wo, bo, residual), B * S * D * 4),
    )(o, wo, bo, residual)


def _geglu_ff(x, nw, nb, w1a, b1a, w1g, b1g, w2, b2, *, row_tile, eps):
    B, S, D = x.shape
    ffdim = w2.shape[0]
    tr = _pick_tile(S, row_tile)
    grid = (B, S // tr)
    flops = 2 * B * S * D * 2 * ffdim + 2 * B * S * ffdim * D
    operands = (x, nw, nb, w1a, b1a, w1g, b1g, w2, b2)
    return pl.pallas_call(
        functools.partial(_ff_kernel, eps=eps),
        out_shape=jax.ShapeDtypeStruct((B, S, D), x.dtype),
        grid=grid,
        in_specs=[
            pl.BlockSpec((1, tr, D), lambda b, r: (b, r, 0)),
            _full_spec(nw.shape), _full_spec(nb.shape),
            _full_spec(w1a.shape), _full_spec(b1a.shape),
            _full_spec(w1g.shape), _full_spec(b1g.shape),
            _full_spec(w2.shape), _full_spec(b2.shape),
        ],
        out_specs=pl.BlockSpec((1, tr, D), lambda b, r: (b, r, 0)),
        compiler_params=_cparams(("parallel", "parallel")),
        cost_estimate=_cost(flops, B * S * ffdim, operands, B * S * D * 4),
    )(*operands)


# ----------------------------------------------------------------------------
# BasicTransformerBlock forward
# ----------------------------------------------------------------------------
def basic_transformer_block(x, context, params, *, heads, d_head, eps=_LN_EPS,
                            row_tile=512, q_tile=512, kv_tile=512):
    """x: (B, S, D) f32, context: (B, Sc, Dc) f32. Returns (B, S, D) f32."""
    scale = d_head ** (-0.5)
    bf = lambda a: a.astype(_BF16)

    # bf16 MXU weights; softmax scale folded into Wq (one-time wrapper work).
    wq1 = bf(params["wq1"] * scale); wk1 = bf(params["wk1"]); wv1 = bf(params["wv1"])
    wo1 = bf(params["wo1"])
    wq2 = bf(params["wq2"] * scale); wk2 = bf(params["wk2"]); wv2 = bf(params["wv2"])
    wo2 = bf(params["wo2"])
    ffdim = params["w_ff2"].shape[0]
    w1a = bf(params["w_ff1"][:, :ffdim]); w1g = bf(params["w_ff1"][:, ffdim:])
    b1a = params["b_ff1"][:, :ffdim];     b1g = params["b_ff1"][:, ffdim:]
    w2 = bf(params["w_ff2"])
    ctx_b = bf(context)

    # ---- attn1: self-attention over norm1(x) ----
    q, k, v = _ln_multi_proj(x, params["n1_w"], params["n1_b"], (wq1, wk1, wv1),
                             apply_ln=True, row_tile=row_tile, eps=eps)
    o = _from_heads(
        _flash_attention(_to_heads(q, heads), _to_heads(k, heads), _to_heads(v, heads),
                         q_tile=q_tile, kv_tile=kv_tile), heads)
    x = _attn_out(o, wo1, params["bo1"], x, row_tile=row_tile)

    # ---- attn2: cross-attention (query from norm2(x), K/V from context, no LN) ----
    (q,) = _ln_multi_proj(x, params["n2_w"], params["n2_b"], (wq2,),
                          apply_ln=True, row_tile=row_tile, eps=eps)
    k, v = _ln_multi_proj(ctx_b, None, None, (wk2, wv2),
                          apply_ln=False, row_tile=row_tile, eps=eps)
    o = _from_heads(
        _flash_attention(_to_heads(q, heads), _to_heads(k, heads), _to_heads(v, heads),
                         q_tile=q_tile, kv_tile=kv_tile), heads)
    x = _attn_out(o, wo2, params["bo2"], x, row_tile=row_tile)

    # ---- GEGLU feed-forward ----
    x = _geglu_ff(x, params["n3_w"], params["n3_b"], w1a, b1a, w1g, b1g, w2,
                  params["b_ff2"], row_tile=row_tile, eps=eps)
    return x


# ----------------------------------------------------------------------------
# Pure-JAX reference (mirrors the PyTorch module; dropout=0, tanh GELU)
# ----------------------------------------------------------------------------
def _reference(x, context, params, *, heads, d_head, eps=_LN_EPS):
    def ln(h, w, b):
        mu = jnp.mean(h, axis=-1, keepdims=True)
        var = jnp.mean((h - mu) ** 2, axis=-1, keepdims=True)
        return (h - mu) / jnp.sqrt(var + eps) * w[0] + b[0]

    def attn(q_in, kv_in, wq, wk, wv, wo, bo):
        b, s, _ = q_in.shape
        q = q_in @ wq
        k = kv_in @ wk
        v = kv_in @ wv

        def split(t):
            return t.reshape(t.shape[0], t.shape[1], heads, d_head).transpose(0, 2, 1, 3)

        qh, kh, vh = split(q), split(k), split(v)
        sim = jnp.einsum("bhid,bhjd->bhij", qh, kh) * (d_head ** (-0.5))
        p = jax.nn.softmax(sim, axis=-1)
        o = jnp.einsum("bhij,bhjd->bhid", p, vh)
        o = o.transpose(0, 2, 1, 3).reshape(b, s, heads * d_head)
        return o @ wo + bo[0]

    h1 = ln(x, params["n1_w"], params["n1_b"])
    x = x + attn(h1, h1, params["wq1"], params["wk1"], params["wv1"],
                 params["wo1"], params["bo1"])
    h2 = ln(x, params["n2_w"], params["n2_b"])
    x = x + attn(h2, context, params["wq2"], params["wk2"], params["wv2"],
                 params["wo2"], params["bo2"])
    h3 = ln(x, params["n3_w"], params["n3_b"])
    proj = h3 @ params["w_ff1"] + params["b_ff1"][0]
    f = params["w_ff2"].shape[0]
    a, gate = proj[..., :f], proj[..., f:]
    return x + (a * _gelu_tanh(gate)) @ params["w_ff2"] + params["b_ff2"][0]


if __name__ == "__main__":
    B, S, D = 2, 16, 32          # batch, sequence, model dim
    HEADS, D_HEAD = 4, 8         # inner = 32
    SC, DC = 8, 48               # context sequence / context dim
    INNER = HEADS * D_HEAD
    FF = 4 * D                   # GEGLU inner dim (mult=4)

    keys = jax.random.split(jax.random.PRNGKey(0), 22)

    def nrm(k, shape, std=0.1):
        return (std * jax.random.normal(k, shape)).astype(jnp.float32)

    x = jax.random.normal(keys[0], (B, S, D), jnp.float32)
    ctx = jax.random.normal(keys[1], (B, SC, DC), jnp.float32)

    params = dict(
        n1_w=1.0 + nrm(keys[2], (1, D)), n1_b=nrm(keys[3], (1, D)),
        wq1=nrm(keys[4], (D, INNER)), wk1=nrm(keys[5], (D, INNER)),
        wv1=nrm(keys[6], (D, INNER)),
        wo1=nrm(keys[7], (INNER, D)), bo1=nrm(keys[8], (1, D)),
        n2_w=1.0 + nrm(keys[9], (1, D)), n2_b=nrm(keys[10], (1, D)),
        wq2=nrm(keys[11], (D, INNER)), wk2=nrm(keys[12], (DC, INNER)),
        wv2=nrm(keys[13], (DC, INNER)),
        wo2=nrm(keys[14], (INNER, D)), bo2=nrm(keys[15], (1, D)),
        n3_w=1.0 + nrm(keys[16], (1, D)), n3_b=nrm(keys[17], (1, D)),
        w_ff1=nrm(keys[18], (D, 2 * FF)), b_ff1=nrm(keys[19], (1, 2 * FF)),
        w_ff2=nrm(keys[20], (FF, D)), b_ff2=nrm(keys[21], (1, D)),
    )

    out = basic_transformer_block(x, ctx, params, heads=HEADS, d_head=D_HEAD)
    out = jax.block_until_ready(out)
    assert out.shape == (B, S, D), out.shape

    ref = jax.block_until_ready(
        _reference(x, ctx, params, heads=HEADS, d_head=D_HEAD))
    out_np = np.asarray(out, dtype=np.float32)
    ref_np = np.asarray(ref, dtype=np.float32)
    # bf16 MXU operands + approx reciprocal -> compare against the f32 reference with a
    # tolerance that absorbs bf16 rounding (~0.4% relative) but catches real bugs.
    assert np.allclose(out_np, ref_np, atol=3e-2, rtol=3e-2), (
        float(np.max(np.abs(out_np - ref_np))))

    print("KERNEL_OK")
</pallas_src>

<mosaic_0001>
module attributes {stable_mosaic.version = 11 : i64} {
  func.func @_ln_proj_kernel(%arg0: i32, %arg1: i32, %arg2: memref<1x16x32xf32, #tpu.memory_space<vmem>>, %arg3: memref<1x32xf32, #tpu.memory_space<vmem>>, %arg4: memref<1x32xf32, #tpu.memory_space<vmem>>, %arg5: memref<32x32xbf16, #tpu.memory_space<vmem>>, %arg6: memref<32x32xbf16, #tpu.memory_space<vmem>>, %arg7: memref<32x32xbf16, #tpu.memory_space<vmem>>, %arg8: memref<1x16x32xbf16, #tpu.memory_space<vmem>>, %arg9: memref<1x16x32xbf16, #tpu.memory_space<vmem>>, %arg10: memref<1x16x32xbf16, #tpu.memory_space<vmem>>) attributes {dimension_semantics = [#tpu.dimension_semantics<parallel>, #tpu.dimension_semantics<parallel>], iteration_bounds = array<i64: 2, 1>, scalar_prefetch = 0 : i64, scratch_operands = 0 : i64, tpu.core_type = #tpu.core_type<tc>, window_params = [{transform_indices = @transform_0, window_bounds = array<i64: 1, 16, 32>}, {pipeline_mode = #tpu.pipeline_mode<synchronous>, transform_indices = @transform_1, window_bounds = array<i64: 1, 32>}, {pipeline_mode = #tpu.pipeline_mode<synchronous>, transform_indices = @transform_2, window_bounds = array<i64: 1, 32>}, {pipeline_mode = #tpu.pipeline_mode<synchronous>, transform_indices = @transform_3, window_bounds = array<i64: 32, 32>}, {pipeline_mode = #tpu.pipeline_mode<synchronous>, transform_indices = @transform_4, window_bounds = array<i64: 32, 32>}, {pipeline_mode = #tpu.pipeline_mode<synchronous>, transform_indices = @transform_5, window_bounds = array<i64: 32, 32>}, {transform_indices = @transform_6, window_bounds = array<i64: 1, 16, 32>}, {transform_indices = @transform_7, window_bounds = array<i64: 1, 16, 32>}, {transform_indices = @transform_8, window_bounds = array<i64: 1, 16, 32>}]} {
    %c0 = arith.constant 0 : index
    %c0_0 = arith.constant 0 : index
    %c0_1 = arith.constant 0 : index
    %0 = vector.load %arg2[%c0, %c0_0, %c0_1] : memref<1x16x32xf32, #tpu.memory_space<vmem>>, vector<1x16x32xf32>
    %1 = vector.shape_cast %0 : vector<1x16x32xf32> to vector<16x32xf32>
    %cst = arith.constant dense<0.000000e+00> : vector<16xf32>
    %2 = vector.multi_reduction <add>, %1, %cst [1] : vector<16x32xf32> to vector<16xf32>
    %3 = vector.shape_cast %2 : vector<16xf32> to vector<16x1xf32>
    %cst_2 = arith.constant 3.200000e+01 : f32
    %4 = vector.broadcast %cst_2 : f32 to vector<16x1xf32>
    %5 = arith.divf %3, %4 : vector<16x1xf32>
    %6 = vector.broadcast %5 : vector<16x1xf32> to vector<16x32xf32>
    %7 = arith.subf %1, %6 : vector<16x32xf32>
    %8 = arith.mulf %7, %7 : vector<16x32xf32>
    %cst_3 = arith.constant dense<0.000000e+00> : vector<16xf32>
    %9 = vector.multi_reduction <add>, %8, %cst_3 [1] : vector<16x32xf32> to vector<16xf32>
    %10 = vector.shape_cast %9 : vector<16xf32> to vector<16x1xf32>
    %cst_4 = arith.constant 3.200000e+01 : f32
    %11 = vector.broadcast %cst_4 : f32 to vector<16x1xf32>
    %12 = arith.divf %10, %11 : vector<16x1xf32>
    %cst_5 = arith.constant 9.99999974E-6 : f32
    %13 = vector.broadcast %cst_5 : f32 to vector<16x1xf32>
    %14 = arith.addf %12, %13 : vector<16x1xf32>
    %15 = math.rsqrt %14 : vector<16x1xf32>
    %16 = vector.broadcast %15 : vector<16x1xf32> to vector<16x32xf32>
    %17 = arith.mulf %7, %16 : vector<16x32xf32>
    %c0_6 = arith.constant 0 : index
    %c0_7 = arith.constant 0 : index
    %18 = vector.load %arg3[%c0_6, %c0_7] : memref<1x32xf32, #tpu.memory_space<vmem>>, vector<1x32xf32>
    %19 = vector.broadcast %18 : vector<1x32xf32> to vector<16x32xf32>
    %20 = arith.mulf %17, %19 : vector<16x32xf32>
    %c0_8 = arith.constant 0 : index
    %c0_9 = arith.constant 0 : index
    %21 = vector.load %arg4[%c0_8, %c0_9] : memref<1x32xf32, #tpu.memory_space<vmem>>, vector<1x32xf32>
    %22 = vector.broadcast %21 : vector<1x32xf32> to vector<16x32xf32>
    %23 = arith.addf %20, %22 : vector<16x32xf32>
    %24 = arith.truncf %23 : vector<16x32xf32> to vector<16x32xbf16>
    %c0_10 = arith.constant 0 : index
    %c0_11 = arith.constant 0 : index
    %25 = vector.load %arg5[%c0_10, %c0_11] : memref<32x32xbf16, #tpu.memory_space<vmem>>, vector<32x32xbf16>
    %cst_12 = arith.constant dense<0.000000e+00> : vector<16x32xf32>
    %26 = tpu.matmul %24, %25, %cst_12 {dimension_numbers = #tpu.dot_dimension_numbers<[1], [0], [0], [1], [0, 0, 1, 1], [], []>} : vector<16x32xbf16>, vector<32x32xbf16>, vector<16x32xf32> -> vector<16x32xf32>
    %27 = arith.truncf %26 : vector<16x32xf32> to vector<16x32xbf16>
    %c0_13 = arith.constant 0 : index
    %c0_14 = arith.constant 0 : index
    %c0_15 = arith.constant 0 : index
    %28 = vector.load %arg8[%c0_13, %c0_14, %c0_15] : memref<1x16x32xbf16, #tpu.memory_space<vmem>>, vector<1x16x32xbf16>
    %29 = vector.shape_cast %28 : vector<1x16x32xbf16> to vector<16x32xbf16>
    %30 = vector.shape_cast %27 : vector<16x32xbf16> to vector<1x16x32xbf16>
    tpu.vector_store %arg8[%c0_13, %c0_14, %c0_15], %30 {strides = array<i32>} : memref<1x16x32xbf16, #tpu.memory_space<vmem>>, vector<1x16x32xbf16>,
    %c0_16 = arith.constant 0 : index
    %c0_17 = arith.constant 0 : index
    %31 = vector.load %arg6[%c0_16, %c0_17] : memref<32x32xbf16, #tpu.memory_space<vmem>>, vector<32x32xbf16>
    %cst_18 = arith.constant dense<0.000000e+00> : vector<16x32xf32>
    %32 = tpu.matmul %24, %31, %cst_18 {dimension_numbers = #tpu.dot_dimension_numbers<[1], [0], [0], [1], [0, 0, 1, 1], [], []>} : vector<16x32xbf16>, vector<32x32xbf16>, vector<16x32xf32> -> vector<16x32xf32>
    %33 = arith.truncf %32 : vector<16x32xf32> to vector<16x32xbf16>
    %c0_19 = arith.constant 0 : index
    %c0_20 = arith.constant 0 : index
    %c0_21 = arith.constant 0 : index
    %34 = vector.load %arg9[%c0_19, %c0_20, %c0_21] : memref<1x16x32xbf16, #tpu.memory_space<vmem>>, vector<1x16x32xbf16>
    %35 = vector.shape_cast %34 : vector<1x16x32xbf16> to vector<16x32xbf16>
    %36 = vector.shape_cast %33 : vector<16x32xbf16> to vector<1x16x32xbf16>
    tpu.vector_store %arg9[%c0_19, %c0_20, %c0_21], %36 {strides = array<i32>} : memref<1x16x32xbf16, #tpu.memory_space<vmem>>, vector<1x16x32xbf16>,
    %c0_22 = arith.constant 0 : index
    %c0_23 = arith.constant 0 : index
    %37 = vector.load %arg7[%c0_22, %c0_23] : memref<32x32xbf16, #tpu.memory_space<vmem>>, vector<32x32xbf16>
    %cst_24 = arith.constant dense<0.000000e+00> : vector<16x32xf32>
    %38 = tpu.matmul %24, %37, %cst_24 {dimension_numbers = #tpu.dot_dimension_numbers<[1], [0], [0], [1], [0, 0, 1, 1], [], []>} : vector<16x32xbf16>, vector<32x32xbf16>, vector<16x32xf32> -> vector<16x32xf32>
    %39 = arith.truncf %38 : vector<16x32xf32> to vector<16x32xbf16>
    %c0_25 = arith.constant 0 : index
    %c0_26 = arith.constant 0 : index
    %c0_27 = arith.constant 0 : index
    %40 = vector.load %arg10[%c0_25, %c0_26, %c0_27] : memref<1x16x32xbf16, #tpu.memory_space<vmem>>, vector<1x16x32xbf16>
    %41 = vector.shape_cast %40 : vector<1x16x32xbf16> to vector<16x32xbf16>
    %42 = vector.shape_cast %39 : vector<16x32xbf16> to vector<1x16x32xbf16>
    tpu.vector_store %arg10[%c0_25, %c0_26, %c0_27], %42 {strides = array<i32>} : memref<1x16x32xbf16, #tpu.memory_space<vmem>>, vector<1x16x32xbf16>,
    return
  }
  func.func @transform_0(%arg0: i32, %arg1: i32) -> (i32, i32, i32) {
    %c0_i32 = arith.constant 0 : i32
    %c0_i32_0 = arith.constant 0 : i32
    return %arg0, %arg1, %c0_i32 : i32, i32, i32
  }
  func.func @transform_1(%arg0: i32, %arg1: i32) -> (i32, i32) {
    %c0_i32 = arith.constant 0 : i32
    %c0_i32_0 = arith.constant 0 : i32
    %c0_i32_1 = arith.constant 0 : i32
    return %c0_i32, %c0_i32_0 : i32, i32
  }
  func.func @transform_2(%arg0: i32, %arg1: i32) -> (i32, i32) {
    %c0_i32 = arith.constant 0 : i32
    %c0_i32_0 = arith.constant 0 : i32
    %c0_i32_1 = arith.constant 0 : i32
    return %c0_i32, %c0_i32_0 : i32, i32
  }
  func.func @transform_3(%arg0: i32, %arg1: i32) -> (i32, i32) {
    %c0_i32 = arith.constant 0 : i32
    %c0_i32_0 = arith.constant 0 : i32
    %c0_i32_1 = arith.constant 0 : i32
    return %c0_i32, %c0_i32_0 : i32, i32
  }
  func.func @transform_4(%arg0: i32, %arg1: i32) -> (i32, i32) {
    %c0_i32 = arith.constant 0 : i32
    %c0_i32_0 = arith.constant 0 : i32
    %c0_i32_1 = arith.constant 0 : i32
    return %c0_i32, %c0_i32_0 : i32, i32
  }
  func.func @transform_5(%arg0: i32, %arg1: i32) -> (i32, i32) {
    %c0_i32 = arith.constant 0 : i32
    %c0_i32_0 = arith.constant 0 : i32
    %c0_i32_1 = arith.constant 0 : i32
    return %c0_i32, %c0_i32_0 : i32, i32
  }
  func.func @transform_6(%arg0: i32, %arg1: i32) -> (i32, i32, i32) {
    %c0_i32 = arith.constant 0 : i32
    %c0_i32_0 = arith.constant 0 : i32
    return %arg0, %arg1, %c0_i32 : i32, i32, i32
  }
  func.func @transform_7(%arg0: i32, %arg1: i32) -> (i32, i32, i32) {
    %c0_i32 = arith.constant 0 : i32
    %c0_i32_0 = arith.constant 0 : i32
    return %arg0, %arg1, %c0_i32 : i32, i32, i32
  }
  func.func @transform_8(%arg0: i32, %arg1: i32) -> (i32, i32, i32) {
    %c0_i32 = arith.constant 0 : i32
    %c0_i32_0 = arith.constant 0 : i32
    return %arg0, %arg1, %c0_i32 : i32, i32, i32
  }
}

</mosaic_0001>

<bundles_post_ra>
// kernel: tpu_custom_call.1
= control target key start
LH: loop header
LB: loop body
LE: loop exit
PB: predicated region body
PF: predicated region fallthrough
CT: control target
= control target key end

     0   :  { %s1999_s0 = inlined_call_operand.hbm [shape: f32[2,16,32], index: 0, kind: input, shape index: {}]   ;;  %s2000_s1 = inlined_call_operand.hbm [shape: f32[1,32], index: 1, kind: input, shape index: {}]   ;;  %s2001_s2 = inlined_call_operand.hbm [shape: f32[1,32], index: 2, kind: input, shape index: {}]   ;;  %s2002_s3 = inlined_call_operand.hbm [shape: bf16[32,32], index: 3, kind: input, shape index: {}]   ;;  %s2003_s4 = inlined_call_operand.hbm [shape: bf16[32,32], index: 4, kind: input, shape index: {}]   ;;  %s2004_s5 = inlined_call_operand.hbm [shape: bf16[32,32], index: 5, kind: input, shape index: {}]   ;;  %s2005_s6 = inlined_call_operand.hbm [shape: bf16[2,16,32], index: 6, kind: output, shape index: {0}]   ;;  %s2006_s7 = inlined_call_operand.hbm [shape: bf16[2,16,32], index: 7, kind: output, shape index: {1}]   ;;  %s2007_s8 = inlined_call_operand.hbm [shape: bf16[2,16,32], index: 8, kind: output, shape index: {2}]  }
   0x1   :  { %2016 = sst [smem:[#allocation23_spill]] %s1999_s0 }
   0x2   :  { %2017 = sst [smem:[#allocation24_spill]] %s2000_s1 }
   0x3   :  { %2018 = sst [smem:[#allocation25_spill]] %s2001_s2 }
   0x4   :  { %2019 = sst [smem:[#allocation26_spill]] %s2002_s3 }
   0x5   :  { %14 = vsyncpa [#allocation3], 0 }
   0x6   :  { %16 = vsyncpa [#allocation3 + $0x1], 0 }
   0x7   :  { %17 = vsyncpa [#allocation6], 0 }
   0x8   :  { %18 = vsyncpa [#allocation9], 0 }
   0x9   :  { %19 = vsyncpa [#allocation12], 0 }
   0xa   :  { %20 = vsyncpa [#allocation4], 0 }
   0xb   :  { %22 = vsyncpa [#allocation4 + $0x1], 0 }
   0xc   :  { %23 = vsyncpa [#allocation15], 0 }
   0xd   :  { %25 = vsyncpa [#allocation15 + $0x1], 0  ;;  %s1578_s27 = smov 0   ;;  %s1580_s28 = smov 0  }
   0xe   :  { %s1582_s29 = smov 0   ;;  %s1584_s30 = smov 0  }
   0xf   :  { %s1586_s9 = smov 0   ;;  %s1588_s10 = smov 0  }
  0x10 LB: > { %s1609_s11 = sadd.s32 4294967295, %s1514_s10   ;;  %p958_p0 = scmp.ge.s32.totalorder %s1514_s10, 1  ;;  %s1514_s10 = sphi %s1588_s10, %s31_s10   ;;  %s1510_s9 = sphi %s1586_s9, %s2050_s9   ;;  %s1506_s30 = sphi %s1584_s30, %s2049_s30   ;;  %s1502_s29 = sphi %s1582_s29, %s2048_s29   ;;  %s1498_s28 = sphi %s1580_s28, %s2047_s28   ;;  %s1494_s27 = sphi %s1578_s27, %s2046_s27  }
  0x11   : > { %p2008_p1 = scmp.eq.s32.totalorder %s1609_s11, 0  ;;  %p265_p2 = scmp.lt.s32.totalorder %s1514_s10, 3 }
  0x12   : > { %s1516_s13 = smov [#allocation5]   ;;  %s1517_s15 = smov [#allocation8]  }
  0x13   : > { %p1614_p3 = pnand %p958_p0, %p265_p2  ;;  %s278_s14 = sshll.u32 %s1516_s13, 4  ;;  %s279_s14 = int_to_ptr.vmem [resolvable:$true] %s278_s14 }
  0x14   : > { %s299_s16 = sshll.u32 %s1517_s15, 4  ;;  %s1518_s18 = smov [#allocation7]   ;;  %s1627_s16 = int_to_ptr.vmem [resolvable:$true] %s299_s16 }
  0x15   : > { %s2020_s12 = scalar_select %p1614_p3, 1, 0 }
  0x16   : > { %p1077_p5 = pneg %p1614_p3  ;;  %s1629_s19 = sshll.u32 %s1518_s18, 4  ;;  %s290_s19 = int_to_ptr.vmem [resolvable:$true] %s1629_s19 }
  0x17   : > { %s2022_s1 = sld [smem:[#allocation24_spill]] }
  0x18   : > { %p1623_p6 = pnand %p1077_p5, %p2008_p1 }
  0x1a   : > { %p1639_p8 = pneg %p1623_p6 }
  0x1d   : > { %s1190_s22 = scalar_lea.hbm %s2022_s1, 16 }
  0x1e   : > { %p1191_p7 = scmp.ne.s32.totalorder %s2022_s1, %s1190_s22  ;;  %p1197_p11 = scmp.lt.u32.totalorder %s1190_s22, %s2022_s1 }
  0x20   : > { %p1193_p9 = pnand %p1639_p8, %p1191_p7 }
  0x22   : > { %p1194_p10 = pneg %p1193_p9 }
  0x24   : > { %p1199_p12 = pnand %p1197_p11, %p1194_p10 }
  0x26   : > { %1202 = shalt.err (!%p1199_p12)
}
  0x27   : > { %s1203_s15 = scalar_lea.vmem %s279_s14, 16  ;;  %s1210_s18 = scalar_lea.vmem %s279_s14, 32 }
  0x28   : > { %p1204_p13 = scmp.ne.s32.totalorder %s279_s14, %s1203_s15  ;;  %p1211_p5 = scmp.lt.s32.totalorder %s279_s14, %s279_s14 }
  0x29   : > { %p1212_p4 = scmp.lt.s32.totalorder %s1210_s18, %s1203_s15 }
  0x2a   : > { %p1206_p0 = pnand %p1204_p13, %p1639_p8 }
  0x2b   : > { %p1213_p1 = por %p1212_p4, %p1211_p5 }
  0x2c   : > { %p1207_p2 = pneg %p1206_p0 }
  0x2e   : > { %p1214_p3 = pnand %p1213_p1, %p1207_p2 }
  0x30   : > { %1217 = shalt.err (!%p1214_p3)
}
  0x31   : > { %1080 = dma.hbm_to_vmem [thread:$0]  (!%p1623_p6), %s2022_s1, 16, %s279_s14, [#allocation6]  }
  0x32   : > { %s2024_s3 = sld [smem:[#allocation26_spill]] }
  0x38   : > { %s1218_s24 = scalar_lea.hbm %s2024_s3, 256 }
  0x39   : > { %p1219_p7 = scmp.ne.s32.totalorder %s2024_s3, %s1218_s24  ;;  %p1225_p1 = scmp.lt.u32.totalorder %s1218_s24, %s2024_s3 }
  0x3b   : > { %p1221_p9 = pnand %p1219_p7, %p1639_p8 }
  0x3d   : > { %p1222_p4 = pneg %p1221_p9 }
  0x3f   : > { %p1227_p3 = pnand %p1225_p1, %p1222_p4 }
  0x41   : > { %1230 = shalt.err (!%p1227_p3)
}
  0x42   : > { %s1231_s14 = scalar_lea.vmem %s1627_s16, 256  ;;  %p1239_p13 = scmp.lt.s32.totalorder %s1627_s16, %s1627_s16 }
  0x43   : > { %p1232_p10 = scmp.ne.s32.totalorder %s1627_s16, %s1231_s14  ;;  %p1240_p0 = scmp.lt.s32.totalorder %s1231_s14, %s1231_s14 }
  0x45   : > { %p1234_p11 = pnand %p1232_p10, %p1639_p8  ;;  %p1241_p2 = por %p1240_p0, %p1239_p13 }
  0x47   : > { %p1235_p12 = pneg %p1234_p11 }
  0x49   : > { %p1242_p5 = pnand %p1241_p2, %p1235_p12 }
  0x4b   : > { %1245 = shalt.err (!%p1242_p5)
}
  0x4c   : > { %s2010_s20 = smov 64   ;;  %s2012_s21 = smov 4  }
  0x4d   : > { %1086 = dma.hbm_to_vmem [thread:$0]  (!%p1623_p6), %s2024_s3, 256, %s1627_s16, [#allocation9], %s2010_s20, %s2010_s20, %s2012_s21  }
  0x4e   : > { %s2025_s2 = sld [smem:[#allocation25_spill]] }
  0x54   : > { %s1246_s13 = scalar_lea.hbm %s2025_s2, 16 }
  0x55   : > { %p1247_p7 = scmp.ne.s32.totalorder %s2025_s2, %s1246_s13  ;;  %p1253_p1 = scmp.lt.u32.totalorder %s1246_s13, %s2025_s2 }
  0x57   : > { %p1249_p9 = pnand %p1247_p7, %p1639_p8 }
  0x59   : > { %p1250_p4 = pneg %p1249_p9 }
  0x5b   : > { %p1255_p3 = pnand %p1253_p1, %p1250_p4 }
  0x5d   : > { %1258 = shalt.err (!%p1255_p3)
}
  0x5e   : > { %s1259_s22 = scalar_lea.vmem %s290_s19, 16  ;;  %s1266_s16 = scalar_lea.vmem %s290_s19, 32 }
  0x5f   : > { %p1260_p10 = scmp.ne.s32.totalorder %s290_s19, %s1259_s22  ;;  %p1267_p13 = scmp.lt.s32.totalorder %s290_s19, %s290_s19 }
  0x60   : > { %p1268_p0 = scmp.lt.s32.totalorder %s1266_s16, %s1259_s22 }
  0x61   : > { %p1262_p11 = pnand %p1260_p10, %p1639_p8 }
  0x62   : > { %p1269_p2 = por %p1268_p0, %p1267_p13 }
  0x63   : > { %p1263_p12 = pneg %p1262_p11 }
  0x65   : > { %p1270_p5 = pnand %p1269_p2, %p1263_p12 }
  0x67   : > { %1273 = shalt.err (!%p1270_p5)
}
  0x68   : > { %1083 = dma.hbm_to_vmem [thread:$0]  (!%p1623_p6), %s2025_s2, 16, %s290_s19, [#allocation6]  }
  0x69   : > { %s1521_s1 = smov [#allocation10]   ;;  %s1522_s13 = smov [#allocation11]  }
  0x6a   : > { %s312_s26 = sshll.u32 %s1521_s1, 4  ;;  %s325_s15 = sshll.u32 %s1522_s13, 4  ;;  %s313_s26 = int_to_ptr.vmem [resolvable:$true] %s312_s26  ;;  %s326_s15 = int_to_ptr.vmem [resolvable:$true] %s325_s15 }
  0x6b   : > { %s1274_s20 = scalar_lea.hbm %s2003_s4, 256 }
  0x6c   : > { %p1275_p7 = scmp.ne.s32.totalorder %s2003_s4, %s1274_s20  ;;  %p1281_p1 = scmp.lt.u32.totalorder %s1274_s20, %s2003_s4 }
  0x6e   : > { %p1277_p9 = pnand %p1275_p7, %p1639_p8 }
  0x70   : > { %p1278_p4 = pneg %p1277_p9 }
  0x72   : > { %p1283_p3 = pnand %p1281_p1, %p1278_p4 }
  0x74   : > { %1286 = shalt.err (!%p1283_p3)
}
  0x75   : > { %s1287_s19 = scalar_lea.vmem %s313_s26, 256  ;;  %p1295_p13 = scmp.lt.s32.totalorder %s313_s26, %s313_s26 }
  0x76   : > { %p1288_p10 = scmp.ne.s32.totalorder %s313_s26, %s1287_s19  ;;  %p1296_p0 = scmp.lt.s32.totalorder %s1287_s19, %s1287_s19 }
  0x78   : > { %p1290_p11 = pnand %p1288_p10, %p1639_p8  ;;  %p1297_p2 = por %p1296_p0, %p1295_p13 }
  0x7a   : > { %p1291_p12 = pneg %p1290_p11 }
  0x7c   : > { %p1298_p5 = pnand %p1297_p2, %p1291_p12 }
  0x7e   : > { %1301 = shalt.err (!%p1298_p5)
}
  0x7f   : > { %s2026_s24 = smov 4   ;;  %s2027_s1 = smov 64  }
  0x80   : > { %1089 = dma.hbm_to_vmem [thread:$0]  (!%p1623_p6), %s2003_s4, 256, %s313_s26, [#allocation9], %s2027_s1, %s2027_s1, %s2026_s24  }
  0x81   : > { %s1302_s14 = scalar_lea.hbm %s2004_s5, 256 }
  0x82   : > { %p1303_p7 = scmp.ne.s32.totalorder %s2004_s5, %s1302_s14  ;;  %p1309_p1 = scmp.lt.u32.totalorder %s1302_s14, %s2004_s5 }
  0x84   : > { %p1305_p9 = pnand %p1303_p7, %p1639_p8 }
  0x86   : > { %p1306_p4 = pneg %p1305_p9 }
  0x88   : > { %p1311_p3 = pnand %p1309_p1, %p1306_p4 }
  0x8a   : > { %1314 = shalt.err (!%p1311_p3)
}
  0x8b   : > { %s1315_s21 = scalar_lea.vmem %s326_s15, 256  ;;  %p1323_p13 = scmp.lt.s32.totalorder %s326_s15, %s326_s15 }
  0x8c   : > { %p1316_p10 = scmp.ne.s32.totalorder %s326_s15, %s1315_s21  ;;  %p1324_p0 = scmp.lt.s32.totalorder %s1315_s21, %s1315_s21 }
  0x8e   : > { %p1318_p11 = pnand %p1316_p10, %p1639_p8  ;;  %p1325_p2 = por %p1324_p0, %p1323_p13 }
  0x90   : > { %p1319_p12 = pneg %p1318_p11 }
  0x92   : > { %p1326_p5 = pnand %p1325_p2, %p1319_p12 }
  0x94   : > { %1329 = shalt.err (!%p1326_p5)
}
  0x95   : > { %1092 = dma.hbm_to_vmem [thread:$0]  (!%p1623_p6), %s2004_s5, 256, %s326_s15, [#allocation12], %s2027_s1, %s2027_s1, %s2026_s24  }
  0x96   : > { %s2014_s17 = sadd.s32 4294967294, %s1514_s10   ;;  %s43_s25 = sadd.s32 1, %s1510_s9 }
  0x97   : > { %s52_s13 = sadd.s32 1, %s1502_s29  ;;  %p45_p8 = scmp.ge.s32.totalorder %s43_s25, 2 }
  0x98   : > { %p59_p7 = scmp.ne.s32.totalorder %s1502_s29, %s1498_s28  ;;  %p60_p9 = scmp.eq.s32.totalorder %s1514_s10, 0 }
  0x99   : > { %p65_p4 = scmp.ne.s32.totalorder %s1498_s28, %s1494_s27  ;;  %s2052_s25 = smov (%p45_p8, %s43_s25), 0 }
  0x9a   : > { %p1752_p1 = por %p60_p9, %p59_p7  ;;  %p2029_p3 = scmp.eq.s32.totalorder %s1609_s11, 0 }
  0x9b   : > { %s47_s24 = ssub.s32 %s1510_s9, %s2052_s25  ;;  %p196_p10 = scmp.eq.s32.totalorder %s1609_s11, 1 }
  0x9c   : > { %p1758_p6 = por %p2029_p3, %p65_p4  ;;  %p50_p11 = scmp.eq.s32.totalorder %s47_s24, 0 }
  0x9d   : > { %p202_p12 = scmp.eq.s32.totalorder %s2014_s17, 1  ;;  %p1767_p13 = por %p196_p10, %p59_p7 }
  0x9e   : > { %p1112_p0 = scmp.lt.s32.totalorder %s1514_s10, 2  ;;  %s339_s16 = sand.u32 1, %s1502_s29  }
  0x9f   : > { %s2031_s1 = scalar_select %p1767_p13, 1, 0 }
  0xa0   : > { %s1773_s14 = scalar_select %p50_p11, %s1502_s29, %s52_s13  }
  0xa1   : > { %p1775_p2 = por %p202_p12, %p65_p4  ;;  %s965_s23 = sshll.u32 %s339_s16, 4 }
  0xa2   : > { %s1006_s19 = sshll.u32 %s1510_s9, 8  ;;  %s2033_s0 = sld [smem:[#allocation23_spill]] }
  0xa3   : > { %s2032_s22 = scalar_select %p1775_p2, 1, 0 }
  0xa4   : > { %s343_s24 = scalar_lea.vmem [#allocation2], %s965_s23  ;;  %p1790_p5 = pnand %p1112_p0, %p1752_p1 }
  0xa5   : > { %s352_s17 = sshll.u32 %s343_s24, 4  ;;  %s1794_s2 = scalar_lea.sflag [#allocation3], %s339_s16  ;;  %s1786_s17 = int_to_ptr.vmem [resolvable:$true] %s352_s17 }
  0xa6   : > { %p1332_p7 = pneg %p1790_p5 }
  0xa8   : > { %s1784_s20 = scalar_lea.hbm %s2033_s0, %s1006_s19  ;;  %s1335_s18 = scalar_lea.hbm %s2033_s0, 512 }
  0xa9   : > { %s1330_s21 = scalar_lea.hbm %s1784_s20, 256  ;;  %p1336_p1 = scmp.lt.u32.totalorder %s1784_s20, %s2033_s0 }
  0xaa   : > { %p1331_p8 = scmp.ne.s32.totalorder %s1784_s20, %s1330_s21  ;;  %p1337_p3 = scmp.lt.u32.totalorder %s1335_s18, %s1330_s21 }
  0xab   : > { %p1339_p11 = scmp.lt.u32.totalorder %s1330_s21, %s1784_s20 }
  0xac   : > { %p1333_p9 = pnand %p1332_p7, %p1331_p8  ;;  %p1338_p10 = por %p1337_p3, %p1336_p1 }
  0xae   : > { %p1334_p4 = pneg %p1333_p9  ;;  %p1340_p12 = por %p1339_p11, %p1338_p10 }
  0xb0   : > { %p1341_p0 = pnand %p1340_p12, %p1334_p4 }
  0xb2   : > { %1344 = shalt.err (!%p1341_p0)
}
  0xb3   : > { %s1345_s16 = scalar_lea.vmem %s1786_s17, 256  ;;  %s1523_s23 = smov [#allocation2]  }
  0xb4   : > { %p1346_p8 = scmp.ne.s32.totalorder %s1786_s17, %s1345_s16  ;;  %s1350_s19 = sshll.u32 %s1523_s23, 4  ;;  %s1351_s19 = int_to_ptr.vmem [resolvable:$false] %s1350_s19 }
  0xb5   : > { %s1352_s26 = scalar_lea.vmem %s1351_s19, 512  ;;  %p1353_p13 = scmp.lt.s32.totalorder %s1786_s17, %s1351_s19 }
  0xb6   : > { %p1348_p9 = pnand %p1346_p8, %p1332_p7  ;;  %p1354_p1 = scmp.lt.s32.totalorder %s1352_s26, %s1345_s16 }
  0xb8   : > { %p1349_p2 = pneg %p1348_p9  ;;  %p1355_p3 = por %p1354_p1, %p1353_p13 }
  0xba   : > { %p1356_p10 = pnand %p1355_p3, %p1349_p2 }
  0xbc   : > { %1359 = shalt.err (!%p1356_p10)
}
  0xbd   : > { %s1524_s21 = smov 128   ;;  %s1525_s18 = smov 8  }
  0xbe   : > { %1096 = dma.hbm_to_vmem [thread:$0]  (!%p1790_p5), %s1784_s20, 256, %s1786_s17, %s1794_s2, %s1524_s21, %s1524_s21, %s1525_s18  }
  0xbf   : > { %p2035_p7 = scmp.ne.s32.totalorder %s2020_s12, 0 }
  0xc0   : > { %s1825_s24 = sand.u32 (!%p2035_p7), 1, %s1498_s28  }
  0xc1   : > { %364 = sbr.rel (%p2035_p7) target bundleno = 809 (0x329), region = 44  ;;  %s969_s16 = sshll.u32 (!%p2035_p7), %s1825_s24, 4 }
  0xc2   : > { %s367_s23 = scalar_lea.sflag (!%p2035_p7), [#allocation3], %s1825_s24  ;;  %s370_s19 = scalar_lea.vmem (!%p2035_p7), [#allocation2], %s969_s16 }
  0xc8   : > { %1469 = dma.done.wait (%p1758_p6), %s367_s23, 256  }
  0xc9   : > { %1471 = vsyncadd (%p1758_p6), %s367_s23, 4294967040  ;;  %p2036_p13 = scmp.eq.s32.totalorder %s1609_s11, 0 }
  0xcb   : > { %1473 = dma.done.wait (%p2036_p13), [#allocation6], 32   ;;  %p2037_p2 = pmov %p2036_p13 }
  0xcd   : > { %1475 = vsyncadd (%p2037_p2), [#allocation6], 4294967264  ;;  %p2038_p5 = pmov %p2037_p2 }
  0xce   : > { %p2039_p4 = pmov %p2037_p2 }
  0xcf   : > { %1477 = dma.done.wait (%p2038_p5), [#allocation9], 512  }
  0xd0   : > { %1479 = vsyncadd (%p2039_p4), [#allocation9], 4294966784  ;;  %p2040_p11 = pmov %p2037_p2 }
  0xd1   : > { %p2041_p12 = pmov %p2037_p2 }
  0xd2   : > { %1481 = dma.done.wait (%p2040_p11), [#allocation12], 256  }
  0xd3   : > { %1483 = vsyncadd (%p2041_p12), [#allocation12], 4294967040  ;;  %vm440_vm0 = vcmask 261120   ;;  %v438_v0 = vld [vmem:[%s370_s19] sm:$0xff]  ;;  %v439_v1 = vld [vmem:[%s370_s19 + $0x8] sm:$0xff]  ;;  %v1526_v16 = vmov 0.0  }
  0xd4   : > { %v441_v2 = vsel %vm440_vm0, %v438_v0, 0.0  ;;  %v444_v3 = vsel %vm440_vm0, %v439_v1, 0.0  ;;  %v1180_v14 = vld [vmem:[#allocation8] sm:$0xff]   ;;  %v1181_v15 = vld [vmem:[#allocation10] sm:$0xff]   ;;  %1025 = vmatprep.subr.bf16.mxu0 %v1526_v16  ;;  %1033 = vmatprep.subr.bf16.mxu1 %v1526_v16  ;;  %v1182_v17 = vld [vmem:[#allocation8 + $0x8] sm:$0xff]   ;;  %vm1527_vm1 = vmmov 0  }
  0xd5   : > { %442 = vadd.xlane.f32.xlu0 %v441_v2  ;;  %1026 = vmatpush3.bf16.msra.mxu0 %v1180_v14  ;;  %v1183_v18 = vld [vmem:[#allocation10 + $0x8] sm:$0xff]   ;;  %v1184_v35 = vld [vmem:[#allocation11] sm:$0xff]   ;;  %v1185_v37 = vld [vmem:[#allocation11 + $0x8] sm:$0xff]   ;;  %s1856_s2 = sshll.u32 %s1825_s24, 3  ;;  %s697_s13 = sand.u32 1, %s1609_s11   ;;  %vm555_vm2 = vcmask 257024  }
  0xd6   : > { %1034 = vmatpush3.bf16.msra.mxu1 %v1181_v15  ;;  %1027 = vmatprep.subr.bf16.mxu0 %v1526_v16  ;;  %v978_v27 = vld [vmem:[#allocation5] ss:$0 sm:$0xff]  ;;  %v979_v31 = vld [vmem:[#allocation7] ss:$0 sm:$0xff]  ;;  %s418_s12 = scalar_lea.vmem [#allocation13], %s1856_s2  ;;  %s425_s15 = scalar_lea.vmem [#allocation14], %s1856_s2 }
  0xd7   : > { %1035 = vmatprep.subr.bf16.mxu1 %v1526_v16  ;;  %1029 = vmatprep.mubr.msk.bf16.mxu0 %vm1527_vm1, %v1526_v16  ;;  %s718_s17 = sshll.u32 %s418_s12, 4  ;;  %s736_s20 = sshll.u32 %s425_s15, 4  ;;  %s1864_s17 = int_to_ptr.vmem [resolvable:$true] %s718_s17  ;;  %s1866_s20 = int_to_ptr.vmem [resolvable:$true] %s736_s20 }
  0xd8   : > { %1037 = vmatprep.mubr.msk.bf16.mxu1 %vm1527_vm1, %v1526_v16  ;;  %s1862_s26 = sshll.u32 %s1506_s30, 7  ;;  %s1884_s19 = scalar_lea.sflag [#allocation15], %s697_s13 }
  0xd9   : > { %445 = vadd.xlane.f32.xlu0 %v444_v3  ;;  %1028 = vmatpush3.bf16.msra.mxu0 %v1182_v17  ;;  %s1874_s21 = scalar_lea.hbm %s2006_s7, %s1862_s26  ;;  %s1880_s23 = scalar_lea.hbm %s2005_s6, %s1862_s26 }
  0xda   : > { %1036 = vmatpush3.bf16.msra.mxu1 %v1183_v18  ;;  %1041 = vmatprep.subr.bf16.mxu0 %v1526_v16  ;;  %s1360_s0 = scalar_lea.vmem %s1866_s20, 128  ;;  %p2042_p0 = scmp.ne.s32.totalorder %s2031_s1, 0 }
  0xdb   : > { %p1361_p6 = scmp.ne.s32.totalorder %s1866_s20, %s1360_s0  ;;  %s1528_s3 = smov [#allocation14]  }
  0xdc   : > { %s1364_s30 = sshll.u32 %s1528_s3, 4  ;;  %s1365_s30 = int_to_ptr.vmem [resolvable:$false] %s1364_s30 }
  0xdd   : > { %p1362_p8 = pnand %p1361_p6, %p2042_p0  ;;  %s1366_s11 = scalar_lea.vmem %s1365_s30, 256 }
  0xde   : > { %p1367_p1 = scmp.lt.s32.totalorder %s1866_s20, %s1365_s30  ;;  %p1368_p3 = scmp.lt.s32.totalorder %s1366_s11, %s1360_s0 }
  0xdf   : > { %p1363_p9 = pneg %p1362_p8 }
  0xe0   : > { %p1369_p10 = por %p1368_p3, %p1367_p1 }
  0xe2   : > { %p1370_p7 = pnand %p1369_p10, %p1363_p9 }
 0x162   : > { %v443_v4 = vpop.xlane.xlu0 %442 }
 0x163   : > { %v448_v5 = vmul.f32 0.03125, %v443_v4 }
 0x165   : > { %v450_v6 = vsub.f32 %v438_v0, %v448_v5 }
 0x166   : > { %v446_v7 = vpop.xlane.xlu0 %445 }
 0x167   : > { %v449_v8 = vmul.f32 0.03125, %v446_v7  ;;  %v452_v9 = vmul.f32 %v450_v6, %v450_v6 }
 0x169   : > { %v451_v10 = vsub.f32 %v439_v1, %v449_v8  ;;  %v454_v11 = vsel %vm440_vm0, %v452_v9, 0.0 }
 0x16a   : > { %455 = vadd.xlane.f32.xlu1 %v454_v11 }
 0x16b   : > { %v453_v12 = vmul.f32 %v451_v10, %v451_v10 }
 0x16d   : > { %v457_v13 = vsel %vm440_vm0, %v453_v12, 0.0 }
 0x16e   : > { %458 = vadd.xlane.f32.xlu1 %v457_v13 }
 0x1f7   : > { %v456_v19 = vpop.xlane.xlu1 %455 }
 0x1f8   : > { %v460_v20 = vmul.f32 0.03125, %v456_v19 }
 0x1fa   : > { %v462_v21 = vadd.f32 1e-05, %v460_v20 }
 0x1fb   : > { %v459_v22 = vpop.xlane.xlu1 %458 }
 0x1fc   : > { %1186 = vrsqrt.f32 %v462_v21  ;;  %v461_v23 = vmul.f32 0.03125, %v459_v22 }
 0x1fe   : > { %v463_v24 = vadd.f32 1e-05, %v461_v23 }
 0x200   : > { %1188 = vrsqrt.f32 %v463_v24 }
 0x206   : > { %v1187_v25 = vpop.eup %1186 }
 0x207   : > { %v466_v26 = vmul.f32 %v1187_v25, %v450_v6 }
 0x209   : > { %v475_v30 = vmul.f32 %v978_v27, %v466_v26 }
 0x20a   : > { %v1189_v28 = vpop.eup %1188 }
 0x20b   : > { %v467_v29 = vmul.f32 %v1189_v28, %v451_v10  ;;  %v484_v33 = vadd.f32 %v979_v31, %v475_v30 }
 0x20d   : > { %v476_v32 = vmul.f32 %v978_v27, %v467_v29 }
 0x20f   : > { %v485_v34 = vadd.f32 %v979_v31, %v476_v32 }
 0x211   : > { %v486_v36 = vpack.c.bf16 %v485_v34, %v484_v33 }
 0x213   : > { %1030 = vmatmul.mubr.msk.bf16.vlgmr.msra.gmra.mrb[0].mxu0 %vm440_vm0, %v486_v36  ;;  %1038 = vmatmul.mubr.msk.bf16.vlgmr.msra.gmra.mrb[0].mxu1 %vm440_vm0, %v486_v36 }
 0x214   : > { %1042 = vmatpush3.bf16.msra.mxu0 %v1184_v35  ;;  %1045 = vmatprep.mubr.msk.bf16.mxu0 %vm1527_vm1, %v1526_v16 }
 0x215   : > { %1043 = vmatprep.subr.bf16.mxu0 %v1526_v16 }
 0x218   : > { %1044 = vmatpush3.bf16.msra.mxu0 %v1185_v37 }
 0x21b   : > { %1046 = vmatmul.mubr.msk.bf16.vlgmr.msra.gmra.mrb[4].mxu0 %vm440_vm0, %v486_v36 }
 0x2e6   : > { %v540_v38 = vpop.f32.mrb[0].mxu0  ;;  %v608_v39 = vpop.f32.mrb[0].mxu1 }
 0x2e7   : > { %v1007_v40 = vpack.c.bf16 %v540_v38, %v540_v38  ;;  %v1009_v41 = vpack.c.bf16 %v608_v39, %v608_v39  ;;  %v1031_v42 = vpop.f32.mrb[1].mxu0  ;;  %v1039_v43 = vpop.f32.mrb[1].mxu1 }
 0x2e8   : > { %v543_v44 = vpop.f32.mrb[2].mxu0  ;;  %v611_v45 = vpop.f32.mrb[2].mxu1 }
 0x2e9   : > { %556 = vst.msk [vmem:[%s418_s12] sm:$0xf] %vm555_vm2, %v1007_v40  ;;  %623 = vst.msk [vmem:[%s425_s15] sm:$0xf] %vm555_vm2, %v1009_v41  ;;  %v1008_v46 = vpack.c.bf16 %v543_v44, %v543_v44  ;;  %v1010_v47 = vpack.c.bf16 %v611_v45, %v611_v45  ;;  %v1032_v48 = vpop.f32.mrb[3].mxu0  ;;  %v1040_v49 = vpop.f32.mrb[3].mxu1 }
 0x2eb   : > { %557 = vst.msk [vmem:[%s418_s12 + $0x4] sm:$0xf] %vm555_vm2, %v1008_v46  ;;  %624 = vst.msk [vmem:[%s425_s15 + $0x4] sm:$0xf] %vm555_vm2, %v1010_v47 }
 0x2ec   : > { %1373 = shalt.err (!%p1370_p7)
}
 0x2ed   : > { %s1374_s12 = scalar_lea.hbm %s1874_s21, 128  ;;  %s1378_s3 = scalar_lea.hbm %s2006_s7, 256 }
 0x2ee   : > { %p1375_p13 = scmp.ne.s32.totalorder %s1874_s21, %s1374_s12  ;;  %p1379_p4 = scmp.lt.u32.totalorder %s1874_s21, %s2006_s7 }
 0x2ef   : > { %p1380_p11 = scmp.lt.u32.totalorder %s1378_s3, %s1374_s12  ;;  %p1382_p6 = scmp.lt.u32.totalorder %s1374_s12, %s1874_s21 }
 0x2f0   : > { %p1376_p2 = pnand %p1375_p13, %p2042_p0 }
 0x2f1   : > { %p1381_p12 = por %p1380_p11, %p1379_p4 }
 0x2f2   : > { %p1377_p5 = pneg %p1376_p2 }
 0x2f3   : > { %p1383_p8 = por %p1382_p6, %p1381_p12 }
 0x2f5   : > { %p1384_p9 = pnand %p1383_p8, %p1377_p5 }
 0x2f7   : > { %1387 = shalt.err (!%p1384_p9)
}
 0x2f8   : > { %s1529_s0 = smov 64   ;;  %s1530_s30 = smov 4  }
 0x2f9   : > { %1072 = dma.vmem_to_hbm [thread:$0]  (%p2042_p0), %s1866_s20, 128, %s1874_s21, %s1884_s19, %s1529_s0, %s1529_s0, %s1530_s30  }
 0x2fa   : > { %s693_s11 = scalar_lea.sflag [#allocation4], %s1825_s24  ;;  %s1388_s12 = scalar_lea.vmem %s1864_s17, 128 }
 0x2fb   : > { %p1389_p1 = scmp.ne.s32.totalorder %s1864_s17, %s1388_s12  ;;  %s1531_s15 = smov [#allocation13]  }
 0x2fc   : > { %s1392_s13 = sshll.u32 %s1531_s15, 4  ;;  %s1393_s13 = int_to_ptr.vmem [resolvable:$false] %s1392_s13 }
 0x2fd   : > { %p1390_p3 = pnand %p1389_p1, %p2042_p0  ;;  %s1394_s3 = scalar_lea.vmem %s1393_s13, 256 }
 0x2fe   : > { %p1395_p7 = scmp.lt.s32.totalorder %s1864_s17, %s1393_s13  ;;  %p1396_p13 = scmp.lt.s32.totalorder %s1394_s3, %s1388_s12 }
 0x2ff   : > { %p1391_p10 = pneg %p1390_p3 }
 0x300   : > { %p1397_p2 = por %p1396_p13, %p1395_p7 }
 0x302   : > { %p1398_p5 = pnand %p1397_p2, %p1391_p10 }
 0x304   : > { %1401 = shalt.err (!%p1398_p5)
}
 0x305   : > { %s1402_s20 = scalar_lea.hbm %s1880_s23, 128  ;;  %s1406_s16 = scalar_lea.hbm %s2005_s6, 256 }
 0x306   : > { %p1403_p4 = scmp.ne.s32.totalorder %s1880_s23, %s1402_s20  ;;  %p1407_p6 = scmp.lt.u32.totalorder %s1880_s23, %s2005_s6 }
 0x307   : > { %p1408_p8 = scmp.lt.u32.totalorder %s1406_s16, %s1402_s20  ;;  %p1410_p1 = scmp.lt.u32.totalorder %s1402_s20, %s1880_s23 }
 0x308   : > { %p1404_p11 = pnand %p1403_p4, %p2042_p0 }
 0x309   : > { %p1409_p9 = por %p1408_p8, %p1407_p6 }
 0x30a   : > { %p1405_p12 = pneg %p1404_p11 }
 0x30b   : > { %p1411_p3 = por %p1410_p1, %p1409_p9 }
 0x30d   : > { %p1412_p10 = pnand %p1411_p3, %p1405_p12 }
 0x30f   : > { %1415 = shalt.err (!%p1412_p10)
}
 0x310   : > { %1071 = dma.vmem_to_hbm [thread:$0]  (%p2042_p0), %s1864_s17, 128, %s1880_s23, %s693_s11, %s1529_s0, %s1529_s0, %s1530_s30   ;;  %v675_v50 = vpop.f32.mrb[4].mxu0 }
 0x311   : > { %s432_s12 = scalar_lea.vmem [#allocation16], %s1856_s2  ;;  %v1011_v51 = vpack.c.bf16 %v675_v50, %v675_v50  ;;  %v1047_v52 = vpop.f32.mrb[5].mxu0  ;;  %s1946_s21 = scalar_lea.hbm %s2007_s8, %s1862_s26 }
 0x312   : > { %s754_s3 = sshll.u32 %s432_s12, 4  ;;  %v678_v53 = vpop.f32.mrb[6].mxu0  ;;  %s1532_s17 = smov [#allocation16]   ;;  %s1940_s3 = int_to_ptr.vmem [resolvable:$true] %s754_s3 }
 0x313   : > { %690 = vst.msk [vmem:[%s432_s12] sm:$0xf] %vm555_vm2, %v1011_v51  ;;  %v1012_v54 = vpack.c.bf16 %v678_v53, %v678_v53  ;;  %v1048_v55 = vpop.f32.mrb[7].mxu0  ;;  %s1416_s2 = scalar_lea.vmem %s1940_s3, 128  ;;  %s1420_s23 = sshll.u32 %s1532_s17, 4  ;;  %s1421_s23 = int_to_ptr.vmem [resolvable:$false] %s1420_s23 }
 0x314   : > { %p1417_p7 = scmp.ne.s32.totalorder %s1940_s3, %s1416_s2  ;;  %s1422_s11 = scalar_lea.vmem %s1421_s23, 256 }
 0x315   : > { %691 = vst.msk [vmem:[%s432_s12 + $0x4] sm:$0xf] %vm555_vm2, %v1012_v54  ;;  %p1423_p5 = scmp.lt.s32.totalorder %s1940_s3, %s1421_s23  ;;  %p1424_p4 = scmp.lt.s32.totalorder %s1422_s11, %s1416_s2 }
 0x316   : > { %p1418_p13 = pnand %p1417_p7, %p2042_p0 }
 0x317   : > { %p1425_p11 = por %p1424_p4, %p1423_p5 }
 0x318   : > { %p1419_p2 = pneg %p1418_p13 }
 0x31a   : > { %p1426_p12 = pnand %p1425_p11, %p1419_p2 }
 0x31c   : > { %1429 = shalt.err (!%p1426_p12)
}
 0x31d   : > { %s1430_s26 = scalar_lea.hbm %s1946_s21, 128  ;;  %s1434_s15 = scalar_lea.hbm %s2007_s8, 256 }
 0x31e   : > { %p1431_p6 = scmp.ne.s32.totalorder %s1946_s21, %s1430_s26  ;;  %p1435_p1 = scmp.lt.u32.totalorder %s1946_s21, %s2007_s8 }
 0x31f   : > { %p1436_p3 = scmp.lt.u32.totalorder %s1434_s15, %s1430_s26  ;;  %p1438_p7 = scmp.lt.u32.totalorder %s1430_s26, %s1946_s21 }
 0x320   : > { %p1432_p8 = pnand %p1431_p6, %p2042_p0 }
 0x321   : > { %p1437_p10 = por %p1436_p3, %p1435_p1 }
 0x322   : > { %p1433_p9 = pneg %p1432_p8 }
 0x323   : > { %p1439_p13 = por %p1438_p7, %p1437_p10 }
 0x325   : > { %p1440_p2 = pnand %p1439_p13, %p1433_p9 }
 0x327   : > { %1443 = shalt.err (!%p1440_p2)
}
 0x328   : > { %1073 = dma.vmem_to_hbm [thread:$0]  (%p2042_p0), %s1940_s3, 128, %s1946_s21, %s1884_s19, %s1529_s0, %s1529_s0, %s1530_s30  }
 0x329 PF: > { %s769_s24 = sand.u32 1, %s1494_s27   ;;  %p2043_p5 = scmp.ne.s32.totalorder %s2032_s22, 0 }
 0x32a   : > { %p2044_p4 = scmp.ge.s32.totalorder %s1514_s10, 2  ;;  %s770_s20 = scalar_lea.sflag [#allocation4], %s769_s24 }
 0x32c   : > { %p1098_p11 = pnand %p2044_p4, %p2043_p5 }
 0x32e   : > { %1485 = dma.done.wait (!%p1098_p11), %s770_s20, 128  }
 0x32f   : > { %1487 = vsyncadd (!%p1098_p11), %s770_s20, 4294967168  ;;  %s2045_s1 = sadd.s32 4294967294, %s1514_s10  }
 0x330   : > { %s778_s2 = sand.u32 1, %s2045_s1  }
 0x331   : > { %s779_s17 = scalar_lea.sflag [#allocation15], %s778_s2 }
 0x332   : > { %1489 = dma.done.wait (!%p1098_p11), %s779_s17, 256  }
 0x333   : > { %1491 = vsyncadd (!%p1098_p11), %s779_s17, 4294967040  ;;  %s31_s10 = sadd.s32 1, %s1514_s10   ;;  %s2046_s27 = smov %s1498_s28 }
 0x334   : > { %p28_p0 = scmp.ge.s32.totalorder %s31_s10, 4   ;;  %s2047_s28 = smov %s1502_s29 }
 0x335   : > { %s2048_s29 = smov %s1773_s14  ;;  %s2049_s30 = smov %s1510_s9 }
 0x336   : > { %s2050_s9 = smov %s2052_s25  ;;  %30 = sbr.rel (!%p28_p0) target bundleno = 16 (0x10), region = 141 }
 0x33d   :  { %793 = vsyncpa [#allocation3], 1 }
 0x33e   :  { %795 = vsyncpa [#allocation3 + $0x1], 1 }
 0x33f   :  { %796 = vsyncpa [#allocation6], 1 }
 0x340   :  { %797 = vsyncpa [#allocation9], 1 }
 0x341   :  { %798 = vsyncpa [#allocation12], 1 }
 0x342   :  { %799 = vsyncpa [#allocation4], 1 }
 0x343   :  { %801 = vsyncpa [#allocation4 + $0x1], 1 }
 0x344   :  { %802 = vsyncpa [#allocation15], 1 }
 0x345   :  { %804 = vsyncpa [#allocation15 + $0x1], 1 }

</bundles_post_ra>
